<compile_context>
chip_gen: v7x
topology: tpu7x:2x2x1
jax: 0.10.0
libtpu: 0.0.40
codegen_flags: <defaults>
</compile_context>

<pallas_src>
import functools

import jax
import jax.numpy as jnp
from jax.experimental import pallas as pl
from jax.experimental.pallas import tpu as pltpu

NEG_SLOPE = 0.01  # nn.LeakyReLU() default negative_slope


def _round_up(n, m):
    return (n + m - 1) // m * m


def _leaky_relu(x):
    return jnp.where(x > 0, x, NEG_SLOPE * x)


_TB_CANDIDATES = (1024, 512, 256, 128, 64, 32, 16, 8)


def _pick_tb(batch, tb_max=1024):
    """Largest batch tile <= tb_max that keeps batch-padding waste small."""
    b8 = _round_up(max(batch, 1), 8)
    if b8 <= tb_max:
        return b8  # single full block
    for tb in _TB_CANDIDATES:
        if tb > tb_max:
            continue
        waste = _round_up(batch, tb) - batch
        if waste <= max(batch // 10, 8):
            return tb
    return 8


def _device_kind():
    try:
        return jax.devices()[0].device_kind.lower()
    except Exception:
        return ""


def generator_kernel(x_ref, w1_ref, b1_ref, w2_ref, b2_ref, w3_ref, b3_ref,
                     o_ref, *, tanh_dtype):
    # Layer 1: Linear(z_dim, 256) + LeakyReLU   (bf16 matmul, f32 accumulate)
    h = jnp.dot(x_ref[...], w1_ref[...], preferred_element_type=jnp.float32)
    h = _leaky_relu(h + b1_ref[...])
    # Layer 2: Linear(256, 256) + LeakyReLU
    h = jnp.dot(h.astype(jnp.bfloat16), w2_ref[...],
                preferred_element_type=jnp.float32)
    h = _leaky_relu(h + b2_ref[...])
    # Layer 3: Linear(256, image_dim) + Tanh  (tanh in bf16 on v6e/v7x, f32 on v5e)
    h = jnp.dot(h.astype(jnp.bfloat16), w3_ref[...],
                preferred_element_type=jnp.float32)
    h = (h + b3_ref[...]).astype(tanh_dtype)
    o_ref[...] = jnp.tanh(h).astype(o_ref.dtype)


def prepare_params(params, n_split=1):
    """Pad + cast weights/biases once (hoisted out of the per-call hot path)."""
    w1, b1, w2, b2, w3, b3 = params
    z_dim, hidden = w1.shape
    image_dim = w3.shape[1]

    k_pad = _round_up(z_dim, 128)                  # 100 -> 128
    n_pad = _round_up(image_dim, 128 * n_split)    # 784 -> 896 (1024 if split)

    w1_p = jnp.zeros((k_pad, hidden), jnp.bfloat16).at[:z_dim, :].set(
        w1.astype(jnp.bfloat16))
    w2_p = w2.astype(jnp.bfloat16)
    w3_p = jnp.zeros((hidden, n_pad), jnp.bfloat16).at[:, :image_dim].set(
        w3.astype(jnp.bfloat16))

    b1_p = b1.astype(jnp.float32).reshape(1, hidden)
    b2_p = b2.astype(jnp.float32).reshape(1, hidden)
    b3_p = jnp.zeros((1, n_pad), jnp.float32).at[:, :image_dim].set(
        b3.astype(jnp.float32).reshape(1, image_dim))

    meta = dict(z_dim=z_dim, hidden=hidden, image_dim=image_dim,
                k_pad=k_pad, n_pad=n_pad, n_split=n_split)
    return (w1_p, b1_p, w2_p, b2_p, w3_p, b3_p), meta


def generator_forward(x, prepared_params, meta, *, tb_max=1024,
                      tanh_dtype=jnp.bfloat16):
    """x: (batch, z_dim) f32. Returns (batch, image_dim) bfloat16."""
    w1_p, b1_p, w2_p, b2_p, w3_p, b3_p = prepared_params
    batch, z_dim = x.shape
    assert z_dim == meta["z_dim"]
    hidden = meta["hidden"]
    image_dim = meta["image_dim"]
    k_pad = meta["k_pad"]
    n_pad = meta["n_pad"]
    n_split = meta["n_split"]
    tn = n_pad // n_split

    tb = _pick_tb(batch, tb_max)
    b_pad = _round_up(batch, tb)
    nb = b_pad // tb

    # Pad + cast the (small) activation input; weights were prepared once.
    x_p = jnp.zeros((b_pad, k_pad), jnp.bfloat16)
    x_p = x_p.at[:batch, :z_dim].set(x.astype(jnp.bfloat16))

    const = lambda i, j: (0, 0)  # resident weights/biases: same block each step
    in_specs = [
        pl.BlockSpec((tb, k_pad), lambda i, j: (i, 0)),   # x tile
        pl.BlockSpec((k_pad, hidden), const),             # w1 (VMEM-resident)
        pl.BlockSpec((1, hidden), const),                  # b1
        pl.BlockSpec((hidden, hidden), const),             # w2
        pl.BlockSpec((1, hidden), const),                  # b2
        pl.BlockSpec((hidden, tn), lambda i, j: (0, j)),   # w3 (split over j)
        pl.BlockSpec((1, tn), lambda i, j: (0, j)),        # b3
    ]
    out_spec = pl.BlockSpec((tb, tn), lambda i, j: (i, j))

    flops = (2 * b_pad * n_split * (k_pad * hidden + hidden * hidden)
             + 2 * b_pad * hidden * n_pad)
    weight_bytes = 2 * (k_pad * hidden + hidden * hidden + hidden * n_pad)
    bias_bytes = 4 * (hidden + hidden + n_pad)
    bytes_accessed = (b_pad * k_pad * 2 * n_split + weight_bytes + bias_bytes
                      + b_pad * n_pad * 2)

    kernel = functools.partial(generator_kernel, tanh_dtype=tanh_dtype)

    out_p = pl.pallas_call(
        kernel,
        out_shape=jax.ShapeDtypeStruct((b_pad, n_pad), jnp.bfloat16),
        grid=(nb, n_split),
        in_specs=in_specs,
        out_specs=out_spec,
        compiler_params=pltpu.CompilerParams(
            dimension_semantics=("parallel", "parallel"),
            vmem_limit_bytes=32 * 1024 * 1024),
        cost_estimate=pl.CostEstimate(
            flops=flops,
            transcendentals=b_pad * n_pad,
            bytes_accessed=bytes_accessed),
    )(x_p, w1_p, b1_p, w2_p, b2_p, w3_p, b3_p)

    return out_p[:batch, :image_dim]


def init_params(key, z_dim, hidden, image_dim):
    """Deterministic synthetic parameters (Kaiming-uniform-like scale)."""
    ks = jax.random.split(key, 6)

    def linear(kw, kb, fan_in, fan_out):
        bound = 1.0 / jnp.sqrt(fan_in)
        w = jax.random.uniform(kw, (fan_in, fan_out), jnp.float32, -bound, bound)
        b = jax.random.uniform(kb, (1, fan_out), jnp.float32, -bound, bound)
        return w, b

    w1, b1 = linear(ks[0], ks[1], z_dim, hidden)
    w2, b2 = linear(ks[2], ks[3], hidden, hidden)
    w3, b3 = linear(ks[4], ks[5], hidden, image_dim)
    return (w1, b1, w2, b2, w3, b3)


def reference_forward(x, params):
    """Plain-JAX f32 reference matching the PyTorch module semantics."""
    w1, b1, w2, b2, w3, b3 = params
    h = _leaky_relu(x @ w1 + b1)
    h = _leaky_relu(h @ w2 + b2)
    return jnp.tanh(h @ w3 + b3)


if __name__ == "__main__":
    z_dim, hidden, image_dim = 100, 256, 784
    batch = 8

    key = jax.random.PRNGKey(0)
    k_params, k_x = jax.random.split(key)
    params = init_params(k_params, z_dim, hidden, image_dim)
    x = jax.random.normal(k_x, (batch, z_dim), jnp.float32)

    kind = _device_kind()
    # v5e has no bf16 EUP path -> keep f32 tanh there; bf16 tanh on v6e/v7x.
    tanh_dtype = jnp.float32 if "v5" in kind else jnp.bfloat16
    # v7x has 2 TensorCores: when the batch grid has only one block, split the
    # output N into 2 "parallel" blocks so the second core gets work.
    single_batch_block = _round_up(batch, 8) <= 1024
    n_split = 2 if ("7" in kind and single_batch_block) else 1

    prepared, meta = prepare_params(params, n_split=n_split)

    out = generator_forward(x, prepared, meta, tanh_dtype=tanh_dtype)
    out = jax.block_until_ready(out)

    ref = reference_forward(x, params)
    assert out.shape == (batch, image_dim), out.shape
    # bf16 matmuls + bf16 tanh/store vs the f32 reference: ~1e-2 abs error.
    assert jnp.allclose(out.astype(jnp.float32), ref, atol=4e-2, rtol=0.0), \
        "mismatch vs reference"

    print("KERNEL_OK")
</pallas_src>

<mosaic_0001>
module attributes {stable_mosaic.version = 11 : i64} {
  func.func @generator_kernel(%arg0: i32, %arg1: i32, %arg2: memref<8x128xbf16, #tpu.memory_space<vmem>>, %arg3: memref<128x256xbf16, #tpu.memory_space<vmem>>, %arg4: memref<1x256xf32, #tpu.memory_space<vmem>>, %arg5: memref<256x256xbf16, #tpu.memory_space<vmem>>, %arg6: memref<1x256xf32, #tpu.memory_space<vmem>>, %arg7: memref<256x896xbf16, #tpu.memory_space<vmem>>, %arg8: memref<1x896xf32, #tpu.memory_space<vmem>>, %arg9: memref<8x896xbf16, #tpu.memory_space<vmem>>) attributes {dimension_semantics = [#tpu.dimension_semantics<parallel>, #tpu.dimension_semantics<parallel>], iteration_bounds = array<i64: 1, 1>, scalar_prefetch = 0 : i64, scratch_operands = 0 : i64, tpu.core_type = #tpu.core_type<tc>, window_params = [{transform_indices = @transform_0, window_bounds = array<i64: 8, 128>}, {pipeline_mode = #tpu.pipeline_mode<synchronous>, transform_indices = @transform_1, window_bounds = array<i64: 128, 256>}, {pipeline_mode = #tpu.pipeline_mode<synchronous>, transform_indices = @transform_2, window_bounds = array<i64: 1, 256>}, {pipeline_mode = #tpu.pipeline_mode<synchronous>, transform_indices = @transform_3, window_bounds = array<i64: 256, 256>}, {pipeline_mode = #tpu.pipeline_mode<synchronous>, transform_indices = @transform_4, window_bounds = array<i64: 1, 256>}, {transform_indices = @transform_5, window_bounds = array<i64: 256, 896>}, {transform_indices = @transform_6, window_bounds = array<i64: 1, 896>}, {transform_indices = @transform_7, window_bounds = array<i64: 8, 896>}]} {
    %c0 = arith.constant 0 : index
    %c0_0 = arith.constant 0 : index
    %0 = vector.load %arg2[%c0, %c0_0] : memref<8x128xbf16, #tpu.memory_space<vmem>>, vector<8x128xbf16>
    %c0_1 = arith.constant 0 : index
    %c0_2 = arith.constant 0 : index
    %1 = vector.load %arg3[%c0_1, %c0_2] : memref<128x256xbf16, #tpu.memory_space<vmem>>, vector<128x256xbf16>
    %cst = arith.constant dense<0.000000e+00> : vector<8x256xf32>
    %2 = tpu.matmul %0, %1, %cst {dimension_numbers = #tpu.dot_dimension_numbers<[1], [0], [0], [1], [0, 0, 1, 1], [], []>} : vector<8x128xbf16>, vector<128x256xbf16>, vector<8x256xf32> -> vector<8x256xf32>
    %c0_3 = arith.constant 0 : index
    %c0_4 = arith.constant 0 : index
    %3 = vector.load %arg4[%c0_3, %c0_4] : memref<1x256xf32, #tpu.memory_space<vmem>>, vector<1x256xf32>
    %4 = vector.broadcast %3 : vector<1x256xf32> to vector<8x256xf32>
    %5 = arith.addf %2, %4 : vector<8x256xf32>
    %cst_5 = arith.constant 0.000000e+00 : f32
    %6 = vector.broadcast %cst_5 : f32 to vector<8x256xf32>
    %7 = arith.cmpf ogt, %5, %6 : vector<8x256xf32>
    %cst_6 = arith.constant 0.00999999977 : f32
    %8 = vector.broadcast %cst_6 : f32 to vector<8x256xf32>
    %9 = arith.mulf %8, %5 : vector<8x256xf32>
    %10 = arith.select %7, %5, %9 : vector<8x256xi1>, vector<8x256xf32>
    %11 = arith.truncf %10 : vector<8x256xf32> to vector<8x256xbf16>
    %c0_7 = arith.constant 0 : index
    %c0_8 = arith.constant 0 : index
    %12 = vector.load %arg5[%c0_7, %c0_8] : memref<256x256xbf16, #tpu.memory_space<vmem>>, vector<256x256xbf16>
    %cst_9 = arith.constant dense<0.000000e+00> : vector<8x256xf32>
    %13 = tpu.matmul %11, %12, %cst_9 {dimension_numbers = #tpu.dot_dimension_numbers<[1], [0], [0], [1], [0, 0, 1, 1], [], []>} : vector<8x256xbf16>, vector<256x256xbf16>, vector<8x256xf32> -> vector<8x256xf32>
    %c0_10 = arith.constant 0 : index
    %c0_11 = arith.constant 0 : index
    %14 = vector.load %arg6[%c0_10, %c0_11] : memref<1x256xf32, #tpu.memory_space<vmem>>, vector<1x256xf32>
    %15 = vector.broadcast %14 : vector<1x256xf32> to vector<8x256xf32>
    %16 = arith.addf %13, %15 : vector<8x256xf32>
    %cst_12 = arith.constant 0.000000e+00 : f32
    %17 = vector.broadcast %cst_12 : f32 to vector<8x256xf32>
    %18 = arith.cmpf ogt, %16, %17 : vector<8x256xf32>
    %cst_13 = arith.constant 0.00999999977 : f32
    %19 = vector.broadcast %cst_13 : f32 to vector<8x256xf32>
    %20 = arith.mulf %19, %16 : vector<8x256xf32>
    %21 = arith.select %18, %16, %20 : vector<8x256xi1>, vector<8x256xf32>
    %22 = arith.truncf %21 : vector<8x256xf32> to vector<8x256xbf16>
    %c0_14 = arith.constant 0 : index
    %c0_15 = arith.constant 0 : index
    %23 = vector.load %arg7[%c0_14, %c0_15] : memref<256x896xbf16, #tpu.memory_space<vmem>>, vector<256x896xbf16>
    %cst_16 = arith.constant dense<0.000000e+00> : vector<8x896xf32>
    %24 = tpu.matmul %22, %23, %cst_16 {dimension_numbers = #tpu.dot_dimension_numbers<[1], [0], [0], [1], [0, 0, 1, 1], [], []>} : vector<8x256xbf16>, vector<256x896xbf16>, vector<8x896xf32> -> vector<8x896xf32>
    %c0_17 = arith.constant 0 : index
    %c0_18 = arith.constant 0 : index
    %25 = vector.load %arg8[%c0_17, %c0_18] : memref<1x896xf32, #tpu.memory_space<vmem>>, vector<1x896xf32>
    %26 = vector.broadcast %25 : vector<1x896xf32> to vector<8x896xf32>
    %27 = arith.addf %24, %26 : vector<8x896xf32>
    %28 = arith.truncf %27 : vector<8x896xf32> to vector<8x896xbf16>
    %29 = math.tanh %28 : vector<8x896xbf16>
    %c0_19 = arith.constant 0 : index
    %c0_20 = arith.constant 0 : index
    %30 = vector.load %arg9[%c0_19, %c0_20] : memref<8x896xbf16, #tpu.memory_space<vmem>>, vector<8x896xbf16>
    tpu.vector_store %arg9[%c0_19, %c0_20], %29 {strides = array<i32>} : memref<8x896xbf16, #tpu.memory_space<vmem>>, vector<8x896xbf16>,
    return
  }
  func.func @transform_0(%arg0: i32, %arg1: i32) -> (i32, i32) {
    %c0_i32 = arith.constant 0 : i32
    %c0_i32_0 = arith.constant 0 : i32
    return %arg0, %c0_i32 : i32, i32
  }
  func.func @transform_1(%arg0: i32, %arg1: i32) -> (i32, i32) {
    %c0_i32 = arith.constant 0 : i32
    %c0_i32_0 = arith.constant 0 : i32
    %c0_i32_1 = arith.constant 0 : i32
    return %c0_i32, %c0_i32_0 : i32, i32
  }
  func.func @transform_2(%arg0: i32, %arg1: i32) -> (i32, i32) {
    %c0_i32 = arith.constant 0 : i32
    %c0_i32_0 = arith.constant 0 : i32
    %c0_i32_1 = arith.constant 0 : i32
    return %c0_i32, %c0_i32_0 : i32, i32
  }
  func.func @transform_3(%arg0: i32, %arg1: i32) -> (i32, i32) {
    %c0_i32 = arith.constant 0 : i32
    %c0_i32_0 = arith.constant 0 : i32
    %c0_i32_1 = arith.constant 0 : i32
    return %c0_i32, %c0_i32_0 : i32, i32
  }
  func.func @transform_4(%arg0: i32, %arg1: i32) -> (i32, i32) {
    %c0_i32 = arith.constant 0 : i32
    %c0_i32_0 = arith.constant 0 : i32
    %c0_i32_1 = arith.constant 0 : i32
    return %c0_i32, %c0_i32_0 : i32, i32
  }
  func.func @transform_5(%arg0: i32, %arg1: i32) -> (i32, i32) {
    %c0_i32 = arith.constant 0 : i32
    %c0_i32_0 = arith.constant 0 : i32
    return %c0_i32, %arg1 : i32, i32
  }
  func.func @transform_6(%arg0: i32, %arg1: i32) -> (i32, i32) {
    %c0_i32 = arith.constant 0 : i32
    %c0_i32_0 = arith.constant 0 : i32
    return %c0_i32, %arg1 : i32, i32
  }
  func.func @transform_7(%arg0: i32, %arg1: i32) -> (i32, i32) {
    %c0_i32 = arith.constant 0 : i32
    return %arg0, %arg1 : i32, i32
  }
}

</mosaic_0001>

<bundles_post_ra>
// kernel: tpu_custom_call.1
= control target key start
LH: loop header
LB: loop body
LE: loop exit
PB: predicated region body
PF: predicated region fallthrough
CT: control target
= control target key end

     0   :  { %12 = vsyncpa [#allocation3], 0  ;;  %s2163_s0 = inlined_call_operand.hbm [shape: bf16[8,128], index: 0, kind: input, shape index: {}]   ;;  %s2164_s1 = inlined_call_operand.hbm [shape: bf16[128,256], index: 1, kind: input, shape index: {}]   ;;  %s2165_s2 = inlined_call_operand.vmem [shape: f32[1,256], index: 2, kind: input, shape index: {}]   ;;  %s2166_s3 = inlined_call_operand.hbm [shape: bf16[256,256], index: 3, kind: input, shape index: {}]   ;;  %s2167_s4 = inlined_call_operand.vmem [shape: f32[1,256], index: 4, kind: input, shape index: {}]   ;;  %s2168_s5 = inlined_call_operand.hbm [shape: bf16[256,896], index: 5, kind: input, shape index: {}]   ;;  %s2169_s6 = inlined_call_operand.vmem [shape: f32[1,896], index: 6, kind: input, shape index: {}]   ;;  %s2170_s7 = inlined_call_operand.hbm [shape: bf16[8,896], index: 7, kind: output, shape index: {}]  }
   0x1   :  { %13 = vsyncpa [#allocation6], 0 }
   0x2   :  { %14 = vsyncpa [#allocation9], 0 }
   0x3   :  { %15 = vsyncpa [#allocation4], 0  ;;  %s2013_s24 = smov [#allocation5]   ;;  %s1895_s28 = scalar_lea.hbm %s2164_s1, 2048 }
   0x4   :  { %s31_s25 = sshll.u32 %s2013_s24, 4  ;;  %p1896_p0 = scmp.ne.s32.totalorder %s2164_s1, %s1895_s28  ;;  %s32_s25 = int_to_ptr.vmem [resolvable:$true] %s31_s25 }
   0x5   :  { %p1899_p1 = scmp.lt.u32.totalorder %s1895_s28, %s2164_s1 }
   0x7   :  { %p1901_p2 = pnand %p1899_p1, %p1896_p0 }
   0x9   :  { %1904 = shalt.err (!%p1901_p2)
}
   0xa   :  { %s1905_s10 = scalar_lea.vmem %s32_s25, 2048  ;;  %p1910_p4 = scmp.lt.s32.totalorder %s32_s25, %s32_s25 }
   0xb   :  { %p1906_p3 = scmp.ne.s32.totalorder %s32_s25, %s1905_s10  ;;  %p1911_p5 = scmp.lt.s32.totalorder %s1905_s10, %s1905_s10 }
   0xd   :  { %p1912_p6 = por %p1911_p5, %p1910_p4 }
   0xf   :  { %p1913_p7 = pnand %p1912_p6, %p1906_p3 }
  0x11   :  { %1916 = shalt.err (!%p1913_p7)
}
  0x12   :  { %s2014_s11 = smov 128   ;;  %s2015_s12 = smov 8  }
  0x13   :  { %37 = dma.hbm_to_vmem [thread:$0]  %s2164_s1, 2048, %s32_s25, [#allocation6], %s2014_s11, %s2014_s11, %s2015_s12  }
  0x14   :  { %s2016_s15 = smov [#allocation2]   ;;  %s2017_s17 = smov [#allocation7]  }
  0x15   :  { %s22_s16 = sshll.u32 %s2016_s15, 4  ;;  %s45_s18 = sshll.u32 %s2017_s17, 4  ;;  %s23_s16 = int_to_ptr.vmem [resolvable:$true] %s22_s16  ;;  %s46_s18 = int_to_ptr.vmem [resolvable:$true] %s45_s18 }
  0x16   :  { %s1917_s21 = scalar_lea.hbm %s2163_s0, 64 }
  0x17   :  { %p1918_p8 = scmp.ne.s32.totalorder %s2163_s0, %s1917_s21  ;;  %p1921_p9 = scmp.lt.u32.totalorder %s1917_s21, %s2163_s0 }
  0x19   :  { %p1923_p10 = pnand %p1921_p9, %p1918_p8 }
  0x1b   :  { %1926 = shalt.err (!%p1923_p10)
}
  0x1c   :  { %s1927_s1 = scalar_lea.vmem %s23_s16, 64  ;;  %p1932_p12 = scmp.lt.s32.totalorder %s23_s16, %s23_s16 }
  0x1d   :  { %p1928_p11 = scmp.ne.s32.totalorder %s23_s16, %s1927_s1  ;;  %p1933_p13 = scmp.lt.s32.totalorder %s1927_s1, %s1927_s1 }
  0x1f   :  { %p1934_p0 = por %p1933_p13, %p1932_p12 }
  0x21   :  { %p1935_p1 = pnand %p1934_p0, %p1928_p11 }
  0x23   :  { %1938 = shalt.err (!%p1935_p1)
}
  0x24   :  { %25 = dma.hbm_to_vmem [thread:$0]  %s2163_s0, 64, %s23_s16, [#allocation3]  }
  0x25   :  { %s1939_s30 = scalar_lea.hbm %s2166_s3, 4096 }
  0x26   :  { %p1940_p2 = scmp.ne.s32.totalorder %s2166_s3, %s1939_s30  ;;  %p1943_p3 = scmp.lt.u32.totalorder %s1939_s30, %s2166_s3 }
  0x28   :  { %p1945_p4 = pnand %p1943_p3, %p1940_p2 }
  0x2a   :  { %1948 = shalt.err (!%p1945_p4)
}
  0x2b   :  { %s1949_s14 = scalar_lea.vmem %s46_s18, 4096  ;;  %p1954_p6 = scmp.lt.s32.totalorder %s46_s18, %s46_s18 }
  0x2c   :  { %p1950_p5 = scmp.ne.s32.totalorder %s46_s18, %s1949_s14  ;;  %p1955_p7 = scmp.lt.s32.totalorder %s1949_s14, %s1949_s14 }
  0x2e   :  { %p1956_p8 = por %p1955_p7, %p1954_p6 }
  0x30   :  { %p1957_p9 = pnand %p1956_p8, %p1950_p5 }
  0x32   :  { %1960 = shalt.err (!%p1957_p9)
}
  0x33   :  { %51 = dma.hbm_to_vmem [thread:$0]  %s2166_s3, 4096, %s46_s18, [#allocation6], %s2014_s11, %s2014_s11, %s2015_s12  }
  0x34   :  { %s2018_s16 = smov [#allocation8]   ;;  %s1961_s21 = scalar_lea.hbm %s2168_s5, 14336 }
  0x35   :  { %s59_s17 = sshll.u32 %s2018_s16, 4  ;;  %p1962_p10 = scmp.ne.s32.totalorder %s2168_s5, %s1961_s21  ;;  %s60_s17 = int_to_ptr.vmem [resolvable:$true] %s59_s17 }
  0x36   :  { %p1965_p11 = scmp.lt.u32.totalorder %s1961_s21, %s2168_s5 }
  0x38   :  { %p1967_p12 = pnand %p1965_p11, %p1962_p10 }
  0x3a   :  { %1970 = shalt.err (!%p1967_p12)
}
  0x3b   :  { %s1971_s1 = scalar_lea.vmem %s60_s17, 14336  ;;  %p1976_p0 = scmp.lt.s32.totalorder %s60_s17, %s60_s17 }
  0x3c   :  { %p1972_p13 = scmp.ne.s32.totalorder %s60_s17, %s1971_s1  ;;  %p1977_p1 = scmp.lt.s32.totalorder %s1971_s1, %s1971_s1 }
  0x3e   :  { %p1978_p2 = por %p1977_p1, %p1976_p0 }
  0x40   :  { %p1979_p3 = pnand %p1978_p2, %p1972_p13 }
  0x42   :  { %1982 = shalt.err (!%p1979_p3)
}
  0x43   :  { %s2019_s3 = smov 448   ;;  %s2020_s11 = smov 28  }
  0x44   :  { %65 = dma.hbm_to_vmem [thread:$0]  %s2168_s5, 14336, %s60_s17, [#allocation9], %s2019_s3, %s2019_s3, %s2020_s11  }
  0x45   :  { %2005 = dma.done.wait [#allocation3], 64  }
  0x46   :  { %2006 = vsyncadd [#allocation3], 4294967232 }
  0x47   :  { %2007 = dma.done.wait [#allocation6], 6144  }
  0x48   :  { %2008 = vsyncadd [#allocation6], 4294961152 }
  0x49   :  { %2009 = dma.done.wait [#allocation9], 14336  }
  0x4a   :  { %2010 = vsyncadd [#allocation9], 4294952960  ;;  %v2021_v0 = vmov 0   ;;  %v1649_v1 = vld [vmem:[#allocation5 + $0x4] ss:$8 sps:$4 sm:$0xff]  }
  0x4b   :  { %222 = vmatprep.mubr.bf16.mxu0 %v2021_v0  ;;  %v1651_v2 = vld [vmem:[#allocation5] ss:$8 sps:$4 sm:$0xff]   ;;  %190 = vmatprep.subr.bf16.mxu0 %v1649_v1  ;;  %v1652_v3 = vld [vmem:[#allocation5 + $0x14] ss:$8 sps:$4 sm:$0xff]   ;;  %v1654_v4 = vld [vmem:[#allocation5 + $0x10] ss:$8 sps:$4 sm:$0xff]  }
  0x4c   :  { %191 = vmatpush1.bf16.msra.mxu0 %v1651_v2  ;;  %v1655_v5 = vld [vmem:[#allocation5 + $0x24] ss:$8 sps:$4 sm:$0xff]   ;;  %v1657_v6 = vld [vmem:[#allocation5 + $0x20] ss:$8 sps:$4 sm:$0xff]   ;;  %v1658_v7 = vld [vmem:[#allocation5 + $0x34] ss:$8 sps:$4 sm:$0xff]  }
  0x4d   :  { %192 = vmatprep.subr.bf16.mxu0 %v1652_v3  ;;  %v1660_v8 = vld [vmem:[#allocation5 + $0x30] ss:$8 sps:$4 sm:$0xff]   ;;  %v1661_v9 = vld [vmem:[#allocation5 + $0x44] ss:$8 sps:$4 sm:$0xff]   ;;  %v1675_v11 = vld [vmem:[#allocation7] ss:$8 sps:$4 sm:$0xff]  }
  0x4e   :  { %v1673_v10 = vld [vmem:[#allocation7 + $0x4] ss:$8 sps:$4 sm:$0xff]   ;;  %v1676_v12 = vld [vmem:[#allocation7 + $0x14] ss:$8 sps:$4 sm:$0xff]   ;;  %v1663_v13 = vld [vmem:[#allocation5 + $0x40] ss:$8 sps:$4 sm:$0xff]  }
  0x4f   :  { %443 = vmatprep.subr.bf16.mxu1 %v1673_v10  ;;  %v1678_v14 = vld [vmem:[#allocation7 + $0x10] ss:$8 sps:$4 sm:$0xff]   ;;  %v1679_v15 = vld [vmem:[#allocation7 + $0x24] ss:$8 sps:$4 sm:$0xff]   ;;  %v1664_v16 = vld [vmem:[#allocation5 + $0x54] ss:$8 sps:$4 sm:$0xff]  }
  0x50   :  { %193 = vmatpush1.bf16.msra.mxu0 %v1654_v4  ;;  %444 = vmatpush1.bf16.msra.mxu1 %v1675_v11  ;;  %v1666_v17 = vld [vmem:[#allocation5 + $0x50] ss:$8 sps:$4 sm:$0xff]   ;;  %v1681_v18 = vld [vmem:[#allocation7 + $0x20] ss:$8 sps:$4 sm:$0xff]   ;;  %v1682_v19 = vld [vmem:[#allocation7 + $0x34] ss:$8 sps:$4 sm:$0xff]  }
  0x51   :  { %194 = vmatprep.subr.bf16.mxu0 %v1655_v5  ;;  %445 = vmatprep.subr.bf16.mxu1 %v1676_v12  ;;  %v1667_v20 = vld [vmem:[#allocation5 + $0x64] ss:$8 sps:$4 sm:$0xff]   ;;  %v1669_v21 = vld [vmem:[#allocation5 + $0x60] ss:$8 sps:$4 sm:$0xff]   ;;  %v1684_v22 = vld [vmem:[#allocation7 + $0x30] ss:$8 sps:$4 sm:$0xff]  }
  0x52   :  { %v1685_v23 = vld [vmem:[#allocation7 + $0x44] ss:$8 sps:$4 sm:$0xff]   ;;  %v1670_v24 = vld [vmem:[#allocation5 + $0x74] ss:$8 sps:$4 sm:$0xff]   ;;  %v1672_v25 = vld [vmem:[#allocation5 + $0x70] ss:$8 sps:$4 sm:$0xff]  }
  0x53   :  { %v1687_v26 = vld [vmem:[#allocation7 + $0x40] ss:$8 sps:$4 sm:$0xff]   ;;  %v1688_v27 = vld [vmem:[#allocation7 + $0x54] ss:$8 sps:$4 sm:$0xff]   ;;  %v1690_v29 = vld [vmem:[#allocation7 + $0x50] ss:$8 sps:$4 sm:$0xff]  }
  0x54   :  { %195 = vmatpush1.bf16.msra.mxu0 %v1657_v6  ;;  %446 = vmatpush1.bf16.msra.mxu1 %v1678_v14  ;;  %v81_v28 = vld [vmem:[#allocation2] sm:$0xf]  ;;  %v1691_v30 = vld [vmem:[#allocation7 + $0x64] ss:$8 sps:$4 sm:$0xff]   ;;  %v1693_v31 = vld [vmem:[#allocation7 + $0x60] ss:$8 sps:$4 sm:$0xff]  }
  0x55   :  { %196 = vmatprep.subr.bf16.mxu0 %v1658_v7  ;;  %447 = vmatprep.subr.bf16.mxu1 %v1679_v15  ;;  %v1694_v32 = vld [vmem:[#allocation7 + $0x74] ss:$8 sps:$4 sm:$0xff]   ;;  %v1696_v33 = vld [vmem:[#allocation7 + $0x70] ss:$8 sps:$4 sm:$0xff]   ;;  %v1697_v34 = vld [vmem:[#allocation7 + $0x84] ss:$8 sps:$4 sm:$0xff]   ;;  %v100_v15 = vlaneseq }
  0x56   :  { %v1699_v35 = vld [vmem:[#allocation7 + $0x80] ss:$8 sps:$4 sm:$0xff]   ;;  %v1700_v36 = vld [vmem:[#allocation7 + $0x94] ss:$8 sps:$4 sm:$0xff]   ;;  %v1702_v37 = vld [vmem:[#allocation7 + $0x90] ss:$8 sps:$4 sm:$0xff]  }
  0x57   :  { %v1703_v38 = vld [vmem:[#allocation7 + $0xa4] ss:$8 sps:$4 sm:$0xff]   ;;  %v1705_v39 = vld [vmem:[#allocation7 + $0xa0] ss:$8 sps:$4 sm:$0xff]   ;;  %v1706_v40 = vld [vmem:[#allocation7 + $0xb4] ss:$8 sps:$4 sm:$0xff]  }
  0x58   :  { %197 = vmatpush1.bf16.msra.mxu0 %v1660_v8  ;;  %448 = vmatpush1.bf16.msra.mxu1 %v1681_v18  ;;  %v1708_v41 = vld [vmem:[#allocation7 + $0xb0] ss:$8 sps:$4 sm:$0xff]   ;;  %v1709_v42 = vld [vmem:[#allocation7 + $0xc4] ss:$8 sps:$4 sm:$0xff]   ;;  %v1711_v43 = vld [vmem:[#allocation7 + $0xc0] ss:$8 sps:$4 sm:$0xff]  }
  0x59   :  { %198 = vmatprep.subr.bf16.mxu0 %v1661_v9  ;;  %449 = vmatprep.subr.bf16.mxu1 %v1682_v19  ;;  %v1712_v44 = vld [vmem:[#allocation7 + $0xd4] ss:$8 sps:$4 sm:$0xff]   ;;  %v1714_v45 = vld [vmem:[#allocation7 + $0xd0] ss:$8 sps:$4 sm:$0xff]   ;;  %v1715_v46 = vld [vmem:[#allocation7 + $0xe4] ss:$8 sps:$4 sm:$0xff]  }
  0x5a   :  { %v1717_v47 = vld [vmem:[#allocation7 + $0xe0] ss:$8 sps:$4 sm:$0xff]   ;;  %v1718_v48 = vld [vmem:[#allocation7 + $0xf4] ss:$8 sps:$4 sm:$0xff]   ;;  %v1720_v49 = vld [vmem:[#allocation7 + $0xf0] ss:$8 sps:$4 sm:$0xff]  }
  0x5b   :  { %v1721_v50 = vld [vmem:[#allocation8] ss:$28 sps:$4 sm:$0xff]   ;;  %v1726_v52 = vld [vmem:[#allocation8 + $0xc] ss:$28 sps:$4 sm:$0xff]   ;;  %v1727_v54 = vld [vmem:[#allocation8 + $0x38] ss:$28 sps:$4 sm:$0xff]  }
  0x5c   :  { %199 = vmatpush1.bf16.msra.mxu0 %v1663_v13  ;;  %450 = vmatpush1.bf16.msra.mxu1 %v1684_v22  ;;  %v1723_v51 = vld [vmem:[#allocation8 + $0x4] ss:$28 sps:$4 sm:$0xff]   ;;  %v1729_v53 = vld [vmem:[#allocation8 + $0x3c] ss:$28 sps:$4 sm:$0xff]   ;;  %v1735_v55 = vld [vmem:[#allocation8 + $0x74] ss:$28 sps:$4 sm:$0xff]  }
  0x5d   :  { %200 = vmatprep.subr.bf16.mxu0 %v1664_v16  ;;  %451 = vmatprep.subr.bf16.mxu1 %v1685_v23  ;;  %v1733_v56 = vld [vmem:[#allocation8 + $0x70] ss:$28 sps:$4 sm:$0xff]   ;;  %v1739_v58 = vld [vmem:[#allocation8 + $0xa8] ss:$28 sps:$4 sm:$0xff]   ;;  %v1745_v60 = vld [vmem:[#allocation8 + $0xe0] ss:$28 sps:$4 sm:$0xff]  }
  0x5e   :  { %v1741_v57 = vld [vmem:[#allocation8 + $0xac] ss:$28 sps:$4 sm:$0xff]   ;;  %v1747_v59 = vld [vmem:[#allocation8 + $0xe4] ss:$28 sps:$4 sm:$0xff]   ;;  %v1753_v61 = vld [vmem:[#allocation8 + $0x11c] ss:$28 sps:$4 sm:$0xff]  }
  0x5f   :  { %v1751_v62 = vld [vmem:[#allocation8 + $0x118] ss:$28 sps:$4 sm:$0xff]   ;;  %v1757_v0 = vld [vmem:[#allocation8 + $0x150] ss:$28 sps:$4 sm:$0xff]   ;;  %v1763_v2 = vld [vmem:[#allocation8 + $0x188] ss:$28 sps:$4 sm:$0xff]  }
  0x60   :  { %201 = vmatpush1.bf16.msra.mxu0 %v1666_v17  ;;  %452 = vmatpush1.bf16.msra.mxu1 %v1687_v26  ;;  %v1759_v63 = vld [vmem:[#allocation8 + $0x154] ss:$28 sps:$4 sm:$0xff]   ;;  %v1765_v1 = vld [vmem:[#allocation8 + $0x18c] ss:$28 sps:$4 sm:$0xff]   ;;  %v1771_v3 = vld [vmem:[#allocation8 + $0x1c4] ss:$28 sps:$4 sm:$0xff]  }
  0x61   :  { %202 = vmatprep.subr.bf16.mxu0 %v1667_v20  ;;  %453 = vmatprep.subr.bf16.mxu1 %v1688_v27  ;;  %v1769_v4 = vld [vmem:[#allocation8 + $0x1c0] ss:$28 sps:$4 sm:$0xff]   ;;  %v1775_v6 = vld [vmem:[#allocation8 + $0x1f8] ss:$28 sps:$4 sm:$0xff]   ;;  %v1781_v8 = vld [vmem:[#allocation8 + $0x230] ss:$28 sps:$4 sm:$0xff]  }
  0x62   :  { %v1777_v5 = vld [vmem:[#allocation8 + $0x1fc] ss:$28 sps:$4 sm:$0xff]   ;;  %v1783_v7 = vld [vmem:[#allocation8 + $0x234] ss:$28 sps:$4 sm:$0xff]   ;;  %v1789_v9 = vld [vmem:[#allocation8 + $0x26c] ss:$28 sps:$4 sm:$0xff]  }
  0x63   :  { %v1787_v10 = vld [vmem:[#allocation8 + $0x268] ss:$28 sps:$4 sm:$0xff]   ;;  %v1793_v12 = vld [vmem:[#allocation8 + $0x2a0] ss:$28 sps:$4 sm:$0xff]   ;;  %v1799_v14 = vld [vmem:[#allocation8 + $0x2d8] ss:$28 sps:$4 sm:$0xff]  }
  0x64   :  { %203 = vmatpush1.bf16.msra.mxu0 %v1669_v21  ;;  %454 = vmatpush1.bf16.msra.mxu1 %v1690_v29  ;;  %v1795_v11 = vld [vmem:[#allocation8 + $0x2a4] ss:$28 sps:$4 sm:$0xff]   ;;  %v1801_v13 = vld [vmem:[#allocation8 + $0x2dc] ss:$28 sps:$4 sm:$0xff]   ;;  %v2117_v16 = vshrl.u32 %v100_v15, 7 }
  0x65   :  { %204 = vmatprep.subr.bf16.mxu0 %v1670_v24  ;;  %455 = vmatprep.subr.bf16.mxu1 %v1691_v30  ;;  %v98_v18 = vld [vmem:[%s2165_s2] sm:$0x3] }
  0x66   :  { %v2120_v17 = vsub.s32 0, %v2117_v16  ;;  %v2126_v19 = vsub.s32 1, %v2117_v16 }
  0x68   :  { %205 = vmatpush1.bf16.msra.mxu0 %v1672_v25  ;;  %456 = vmatpush1.bf16.msra.mxu1 %v1693_v31  ;;  %v103_v20 = vrot.slane %v98_v18, %v2120_v17  ;;  %v107_v21 = vrot.slane %v98_v18, %v2126_v19 }
  0x69   :  { %457 = vmatprep.subr.bf16.mxu1 %v1694_v32  ;;  %1233 = vmatprep.subr.bf16.mxu0 %v1723_v51  ;;  %v1780_v51 = vld [vmem:[#allocation8 + $0x204] ss:$28 sps:$4 sm:$0xff]  }
  0x6b   :  { %223 = vmatmul.mubr.bf16.vlgmr.msra.gmra.mrb[0].mxu0 %v81_v28 }
  0x6c   :  { %458 = vmatpush1.bf16.msra.mxu1 %v1696_v33  ;;  %1234 = vmatpush1.bf16.msra.mxu0 %v1721_v50  ;;  %v1724_v33 = vld [vmem:[#allocation8 + $0x8] ss:$28 sps:$4 sm:$0xff]  }
  0x6d   :  { %459 = vmatprep.subr.bf16.mxu1 %v1697_v34  ;;  %1235 = vmatprep.subr.bf16.mxu0 %v1729_v53  ;;  %v1772_v50 = vld [vmem:[#allocation8 + $0x1c8] ss:$28 sps:$4 sm:$0xff]   ;;  %v1786_v53 = vld [vmem:[#allocation8 + $0x23c] ss:$28 sps:$4 sm:$0xff]  }
  0x70   :  { %460 = vmatpush1.bf16.msra.mxu1 %v1699_v35  ;;  %1236 = vmatpush1.bf16.msra.mxu0 %v1727_v54  ;;  %v1732_v35 = vld [vmem:[#allocation8 + $0x44] ss:$28 sps:$4 sm:$0xff]   ;;  %v1784_v54 = vld [vmem:[#allocation8 + $0x238] ss:$28 sps:$4 sm:$0xff]  }
  0x71   :  { %461 = vmatprep.subr.bf16.mxu1 %v1700_v36  ;;  %1237 = vmatprep.subr.bf16.mxu0 %v1735_v55  ;;  %v1730_v36 = vld [vmem:[#allocation8 + $0x40] ss:$28 sps:$4 sm:$0xff]   ;;  %v1792_v55 = vld [vmem:[#allocation8 + $0x274] ss:$28 sps:$4 sm:$0xff]  }
  0x74   :  { %462 = vmatpush1.bf16.msra.mxu1 %v1702_v37  ;;  %1238 = vmatpush1.bf16.msra.mxu0 %v1733_v56  ;;  %v1738_v37 = vld [vmem:[#allocation8 + $0x7c] ss:$28 sps:$4 sm:$0xff]   ;;  %v1790_v56 = vld [vmem:[#allocation8 + $0x270] ss:$28 sps:$4 sm:$0xff]  }
  0x75   :  { %463 = vmatprep.subr.bf16.mxu1 %v1703_v38  ;;  %1239 = vmatprep.subr.bf16.mxu0 %v1741_v57  ;;  %v1736_v38 = vld [vmem:[#allocation8 + $0x78] ss:$28 sps:$4 sm:$0xff]   ;;  %v1798_v57 = vld [vmem:[#allocation8 + $0x2ac] ss:$28 sps:$4 sm:$0xff]  }
  0x78   :  { %464 = vmatpush1.bf16.msra.mxu1 %v1705_v39  ;;  %1240 = vmatpush1.bf16.msra.mxu0 %v1739_v58  ;;  %v1744_v39 = vld [vmem:[#allocation8 + $0xb4] ss:$28 sps:$4 sm:$0xff]   ;;  %v1796_v58 = vld [vmem:[#allocation8 + $0x2a8] ss:$28 sps:$4 sm:$0xff]  }
  0x79   :  { %465 = vmatprep.subr.bf16.mxu1 %v1706_v40  ;;  %1241 = vmatprep.subr.bf16.mxu0 %v1747_v59  ;;  %v1742_v40 = vld [vmem:[#allocation8 + $0xb0] ss:$28 sps:$4 sm:$0xff]   ;;  %v1804_v59 = vld [vmem:[#allocation8 + $0x2e4] ss:$28 sps:$4 sm:$0xff]  }
  0x7c   :  { %466 = vmatpush1.bf16.msra.mxu1 %v1708_v41  ;;  %1242 = vmatpush1.bf16.msra.mxu0 %v1745_v60  ;;  %v1750_v41 = vld [vmem:[#allocation8 + $0xec] ss:$28 sps:$4 sm:$0xff]   ;;  %v1802_v60 = vld [vmem:[#allocation8 + $0x2e0] ss:$28 sps:$4 sm:$0xff]  }
  0x7d   :  { %467 = vmatprep.subr.bf16.mxu1 %v1709_v42  ;;  %1243 = vmatprep.subr.bf16.mxu0 %v1753_v61  ;;  %v1748_v42 = vld [vmem:[#allocation8 + $0xe8] ss:$28 sps:$4 sm:$0xff]   ;;  %v1807_v61 = vld [vmem:[#allocation8 + $0x314] ss:$28 sps:$4 sm:$0xff]  }
  0x80   :  { %468 = vmatpush1.bf16.msra.mxu1 %v1711_v43  ;;  %1244 = vmatpush1.bf16.msra.mxu0 %v1751_v62  ;;  %v1756_v43 = vld [vmem:[#allocation8 + $0x124] ss:$28 sps:$4 sm:$0xff]   ;;  %v1810_v62 = vld [vmem:[#allocation8 + $0x31c] ss:$28 sps:$4 sm:$0xff]  }
  0x81   :  { %469 = vmatprep.subr.bf16.mxu1 %v1712_v44  ;;  %1245 = vmatprep.subr.bf16.mxu0 %v1759_v63  ;;  %v1754_v44 = vld [vmem:[#allocation8 + $0x120] ss:$28 sps:$4 sm:$0xff]   ;;  %v1805_v63 = vld [vmem:[#allocation8 + $0x310] ss:$28 sps:$4 sm:$0xff]  }
  0x84   :  { %470 = vmatpush1.bf16.msra.mxu1 %v1714_v45  ;;  %1246 = vmatpush1.bf16.msra.mxu0 %v1757_v0  ;;  %v1762_v45 = vld [vmem:[#allocation8 + $0x15c] ss:$28 sps:$4 sm:$0xff]  }
  0x85   :  { %471 = vmatprep.subr.bf16.mxu1 %v1715_v46  ;;  %1247 = vmatprep.subr.bf16.mxu0 %v1765_v1  ;;  %v1760_v46 = vld [vmem:[#allocation8 + $0x158] ss:$28 sps:$4 sm:$0xff]   ;;  %v1813_v1 = vld [vmem:[#allocation8 + $0x34c] ss:$28 sps:$4 sm:$0xff]  }
  0x86   :  { %v1808_v0 = vld [vmem:[#allocation8 + $0x318] ss:$28 sps:$4 sm:$0xff]  }
  0x88   :  { %472 = vmatpush1.bf16.msra.mxu1 %v1717_v47  ;;  %1248 = vmatpush1.bf16.msra.mxu0 %v1763_v2  ;;  %v1768_v47 = vld [vmem:[#allocation8 + $0x194] ss:$28 sps:$4 sm:$0xff]  }
  0x89   :  { %473 = vmatprep.subr.bf16.mxu1 %v1718_v48  ;;  %1249 = vmatprep.subr.bf16.mxu0 %v1771_v3  ;;  %v1766_v48 = vld [vmem:[#allocation8 + $0x190] ss:$28 sps:$4 sm:$0xff]   ;;  %v1811_v3 = vld [vmem:[#allocation8 + $0x348] ss:$28 sps:$4 sm:$0xff]  }
  0x8a   :  { %v1816_v2 = vld [vmem:[#allocation8 + $0x354] ss:$28 sps:$4 sm:$0xff]  }
  0x8c   :  { %474 = vmatpush1.bf16.msra.mxu1 %v1720_v49  ;;  %1250 = vmatpush1.bf16.msra.mxu0 %v1769_v4  ;;  %v1774_v49 = vld [vmem:[#allocation8 + $0x1cc] ss:$28 sps:$4 sm:$0xff]  }
  0x8d   :  { %1274 = vmatprep.subr.bf16.mxu1 %v1726_v52  ;;  %1251 = vmatprep.subr.bf16.mxu0 %v1777_v5  ;;  %v1778_v52 = vld [vmem:[#allocation8 + $0x200] ss:$28 sps:$4 sm:$0xff]   ;;  %v1814_v4 = vld [vmem:[#allocation8 + $0x350] ss:$28 sps:$4 sm:$0xff]  }
  0x8e   :  { %v1819_v5 = vld [vmem:[#allocation8 + $0x14] ss:$28 sps:$4 sm:$0xff]  }
  0x90   :  { %1252 = vmatpush1.bf16.msra.mxu0 %v1775_v6  ;;  %v1820_v6 = vld [vmem:[#allocation8 + $0x1d8] ss:$28 sps:$4 sm:$0xff]  }
  0x91   :  { %1253 = vmatprep.subr.bf16.mxu0 %v1783_v7  ;;  %v271_v7 = vld [vmem:[%s2167_s4] sm:$0x3] }
  0x94   :  { %1254 = vmatpush1.bf16.msra.mxu0 %v1781_v8  ;;  %v276_v8 = vrot.slane %v271_v7, %v2120_v17 }
  0x95   :  { %1255 = vmatprep.subr.bf16.mxu0 %v1789_v9  ;;  %v280_v9 = vrot.slane %v271_v7, %v2126_v19  ;;  %v632_v7 = vsub.s32 2, %v2117_v16 }
  0x98   :  { %1256 = vmatpush1.bf16.msra.mxu0 %v1787_v10 }
  0x99   :  { %1257 = vmatprep.subr.bf16.mxu0 %v1795_v11 }
  0x9c   :  { %1258 = vmatpush1.bf16.msra.mxu0 %v1793_v12 }
  0x9d   :  { %1259 = vmatprep.subr.bf16.mxu0 %v1801_v13 }
  0xa0   :  { %1260 = vmatpush1.bf16.msra.mxu0 %v1799_v14 }
  0xa1   :  { %1261 = vmatprep.subr.bf16.mxu0 %v1807_v61  ;;  %v1868_v61 = vld [vmem:[#allocation8 + $0x27c] ss:$28 sps:$4 sm:$0xff]  }
  0xa4   :  { %1262 = vmatpush1.bf16.msra.mxu0 %v1805_v63  ;;  %v1871_v63 = vld [vmem:[#allocation8 + $0x2b4] ss:$28 sps:$4 sm:$0xff]  }
  0xa5   :  { %1263 = vmatprep.subr.bf16.mxu0 %v1813_v1  ;;  %v1874_v1 = vld [vmem:[#allocation8 + $0x2ec] ss:$28 sps:$4 sm:$0xff]  }
  0xa8   :  { %1264 = vmatpush1.bf16.msra.mxu0 %v1811_v3  ;;  %v1877_v3 = vld [vmem:[#allocation8 + $0x324] ss:$28 sps:$4 sm:$0xff]  }
  0xa9   :  { %1315 = vmatprep.subr.bf16.mxu0 %v1819_v5  ;;  %v1880_v5 = vld [vmem:[#allocation8 + $0x35c] ss:$28 sps:$4 sm:$0xff]  }
 0x13e   :  { %v224_v22 = vpop.f32.mrb[0].mxu0 }
 0x13f   :  { %v225_v23 = vadd.f32 %v224_v22, %v103_v20  ;;  %v226_v24 = vpop.f32.mrb[1].mxu0 }
 0x140   :  { %v227_v25 = vadd.f32 %v226_v24, %v107_v21  ;;  %v228_v26 = vpop.f32.mrb[2].mxu0  ;;  %v1817_v24 = vld [vmem:[#allocation8 + $0x10] ss:$28 sps:$4 sm:$0xff]  }
 0x141   :  { %vm231_vm0 = vcmp.gt.f32.partialorder %v225_v23, 0.0  ;;  %v233_v27 = vmul.f32 0.01, %v225_v23  ;;  %v229_v28 = vpop.f32.mrb[3].mxu0 }
 0x142   :  { %vm232_vm1 = vcmp.gt.f32.partialorder %v227_v25, 0.0  ;;  %v234_v29 = vmul.f32 0.01, %v227_v25  ;;  %v1825_v28 = vld [vmem:[#allocation8 + $0x210] ss:$28 sps:$4 sm:$0xff]  }
 0x143   :  { %v235_v30 = vsel %vm231_vm0, %v225_v23, %v233_v27  ;;  %v1824_v27 = vld [vmem:[#allocation8 + $0x4c] ss:$28 sps:$4 sm:$0xff]  }
 0x144   :  { %v236_v31 = vsel %vm232_vm1, %v227_v25, %v234_v29  ;;  %v237_v34 = vpack.c.bf16 %v235_v30, %v235_v30  ;;  %v1821_v25 = vld [vmem:[#allocation8 + $0x18] ss:$28 sps:$4 sm:$0xff]   ;;  %v1822_v29 = vld [vmem:[#allocation8 + $0x48] ss:$28 sps:$4 sm:$0xff]   ;;  %v1826_v30 = vld [vmem:[#allocation8 + $0x50] ss:$28 sps:$4 sm:$0xff]  }
 0x145   :  { %v238_v32 = vpack.c.bf16 %v236_v31, %v236_v31  ;;  %v1829_v31 = vld [vmem:[#allocation8 + $0x84] ss:$28 sps:$4 sm:$0xff]  }
 0x147   :  { %475 = vmatprep.mubr.bf16.mxu1 %v238_v32  ;;  %v1830_v32 = vld [vmem:[#allocation8 + $0x248] ss:$28 sps:$4 sm:$0xff]  }
 0x148   :  { %476 = vmatmul.mubr.bf16.vlgmr.msra.gmra.mrb[0].mxu1 %v237_v34  ;;  %v1831_v34 = vld [vmem:[#allocation8 + $0x88] ss:$28 sps:$4 sm:$0xff]  }
 0x149   :  { %1275 = vmatpush1.bf16.msra.mxu1 %v1724_v33  ;;  %v1827_v33 = vld [vmem:[#allocation8 + $0x80] ss:$28 sps:$4 sm:$0xff]  }
 0x14a   :  { %1276 = vmatprep.subr.bf16.mxu1 %v1732_v35  ;;  %v1834_v35 = vld [vmem:[#allocation8 + $0xbc] ss:$28 sps:$4 sm:$0xff]  }
 0x14d   :  { %1277 = vmatpush1.bf16.msra.mxu1 %v1730_v36  ;;  %v1835_v36 = vld [vmem:[#allocation8 + $0x280] ss:$28 sps:$4 sm:$0xff]  }
 0x14e   :  { %1278 = vmatprep.subr.bf16.mxu1 %v1738_v37  ;;  %v1832_v37 = vld [vmem:[#allocation8 + $0xb8] ss:$28 sps:$4 sm:$0xff]  }
 0x151   :  { %1279 = vmatpush1.bf16.msra.mxu1 %v1736_v38  ;;  %v1836_v38 = vld [vmem:[#allocation8 + $0xc0] ss:$28 sps:$4 sm:$0xff]  }
 0x152   :  { %1280 = vmatprep.subr.bf16.mxu1 %v1744_v39  ;;  %v1839_v39 = vld [vmem:[#allocation8 + $0xf4] ss:$28 sps:$4 sm:$0xff]  }
 0x155   :  { %1281 = vmatpush1.bf16.msra.mxu1 %v1742_v40  ;;  %v1840_v40 = vld [vmem:[#allocation8 + $0x2b8] ss:$28 sps:$4 sm:$0xff]  }
 0x156   :  { %1282 = vmatprep.subr.bf16.mxu1 %v1750_v41  ;;  %v1837_v41 = vld [vmem:[#allocation8 + $0xf0] ss:$28 sps:$4 sm:$0xff]  }
 0x159   :  { %1283 = vmatpush1.bf16.msra.mxu1 %v1748_v42  ;;  %v1841_v42 = vld [vmem:[#allocation8 + $0xf8] ss:$28 sps:$4 sm:$0xff]  }
 0x15a   :  { %1284 = vmatprep.subr.bf16.mxu1 %v1756_v43  ;;  %v1844_v43 = vld [vmem:[#allocation8 + $0x12c] ss:$28 sps:$4 sm:$0xff]  }
 0x15d   :  { %1285 = vmatpush1.bf16.msra.mxu1 %v1754_v44  ;;  %v1845_v44 = vld [vmem:[#allocation8 + $0x2f0] ss:$28 sps:$4 sm:$0xff]  }
 0x15e   :  { %1286 = vmatprep.subr.bf16.mxu1 %v1762_v45  ;;  %v1842_v45 = vld [vmem:[#allocation8 + $0x128] ss:$28 sps:$4 sm:$0xff]  }
 0x161   :  { %1287 = vmatpush1.bf16.msra.mxu1 %v1760_v46  ;;  %v1846_v46 = vld [vmem:[#allocation8 + $0x130] ss:$28 sps:$4 sm:$0xff]  }
 0x162   :  { %1288 = vmatprep.subr.bf16.mxu1 %v1768_v47  ;;  %v1849_v47 = vld [vmem:[#allocation8 + $0x164] ss:$28 sps:$4 sm:$0xff]  }
 0x165   :  { %1289 = vmatpush1.bf16.msra.mxu1 %v1766_v48  ;;  %v1850_v48 = vld [vmem:[#allocation8 + $0x328] ss:$28 sps:$4 sm:$0xff]  }
 0x166   :  { %1290 = vmatprep.subr.bf16.mxu1 %v1774_v49  ;;  %v1847_v49 = vld [vmem:[#allocation8 + $0x160] ss:$28 sps:$4 sm:$0xff]  }
 0x169   :  { %1291 = vmatpush1.bf16.msra.mxu1 %v1772_v50  ;;  %v1851_v50 = vld [vmem:[#allocation8 + $0x168] ss:$28 sps:$4 sm:$0xff]  }
 0x16a   :  { %1292 = vmatprep.subr.bf16.mxu1 %v1780_v51  ;;  %v1854_v51 = vld [vmem:[#allocation8 + $0x19c] ss:$28 sps:$4 sm:$0xff]  }
 0x16d   :  { %1293 = vmatpush1.bf16.msra.mxu1 %v1778_v52  ;;  %v1855_v52 = vld [vmem:[#allocation8 + $0x360] ss:$28 sps:$4 sm:$0xff]  }
 0x16e   :  { %1294 = vmatprep.subr.bf16.mxu1 %v1786_v53  ;;  %v1852_v53 = vld [vmem:[#allocation8 + $0x198] ss:$28 sps:$4 sm:$0xff]  }
 0x171   :  { %1295 = vmatpush1.bf16.msra.mxu1 %v1784_v54  ;;  %v1856_v54 = vld [vmem:[#allocation8 + $0x1a0] ss:$28 sps:$4 sm:$0xff]  }
 0x172   :  { %1296 = vmatprep.subr.bf16.mxu1 %v1792_v55  ;;  %v1859_v55 = vld [vmem:[#allocation8 + $0x1d4] ss:$28 sps:$4 sm:$0xff]  }
 0x175   :  { %1297 = vmatpush1.bf16.msra.mxu1 %v1790_v56  ;;  %v1857_v56 = vld [vmem:[#allocation8 + $0x1d0] ss:$28 sps:$4 sm:$0xff]  }
 0x176   :  { %1298 = vmatprep.subr.bf16.mxu1 %v1798_v57  ;;  %v1862_v57 = vld [vmem:[#allocation8 + $0x20c] ss:$28 sps:$4 sm:$0xff]  }
 0x179   :  { %1299 = vmatpush1.bf16.msra.mxu1 %v1796_v58  ;;  %v1860_v58 = vld [vmem:[#allocation8 + $0x208] ss:$28 sps:$4 sm:$0xff]  }
 0x17a   :  { %1300 = vmatprep.subr.bf16.mxu1 %v1804_v59  ;;  %v1865_v59 = vld [vmem:[#allocation8 + $0x244] ss:$28 sps:$4 sm:$0xff]  }
 0x17d   :  { %1301 = vmatpush1.bf16.msra.mxu1 %v1802_v60  ;;  %v1863_v60 = vld [vmem:[#allocation8 + $0x240] ss:$28 sps:$4 sm:$0xff]  }
 0x17e   :  { %1302 = vmatprep.subr.bf16.mxu1 %v1810_v62  ;;  %v1866_v62 = vld [vmem:[#allocation8 + $0x278] ss:$28 sps:$4 sm:$0xff]  }
 0x181   :  { %1303 = vmatpush1.bf16.msra.mxu1 %v1808_v0  ;;  %v1869_v0 = vld [vmem:[#allocation8 + $0x2b0] ss:$28 sps:$4 sm:$0xff]  }
 0x182   :  { %1304 = vmatprep.subr.bf16.mxu1 %v1816_v2  ;;  %v1872_v2 = vld [vmem:[#allocation8 + $0x2e8] ss:$28 sps:$4 sm:$0xff]  }
 0x185   :  { %1305 = vmatpush1.bf16.msra.mxu1 %v1814_v4  ;;  %v1875_v4 = vld [vmem:[#allocation8 + $0x320] ss:$28 sps:$4 sm:$0xff]  }
 0x186   :  { %1617 = vmatprep.subr.bf16.mxu1 %v1820_v6  ;;  %v1878_v6 = vld [vmem:[#allocation8 + $0x358] ss:$28 sps:$4 sm:$0xff]  }
 0x21b   :  { %v477_v10 = vpop.f32.mrb[0].mxu1 }
 0x21c   :  { %v478_v11 = vadd.f32 %v477_v10, %v276_v8  ;;  %v479_v12 = vpop.f32.mrb[1].mxu1  ;;  %v620_v8 = vld [vmem:[%s2169_s6] sm:$0xff]  ;;  %s2022_s6 = smov [#allocation10]  }
 0x21d   :  { %v480_v13 = vadd.f32 %v479_v12, %v280_v9  ;;  %v481_v14 = vpop.f32.mrb[2].mxu1  ;;  %v636_v9 = vsub.s32 3, %v2117_v16  ;;  %v625_v10 = vrot.slane %v620_v8, %v2120_v17  ;;  %v629_v12 = vrot.slane %v620_v8, %v2126_v19  ;;  %s1442_s29 = sshll.u32 %s2022_s6, 4  ;;  %s1443_s29 = int_to_ptr.vmem [resolvable:$true] %s1442_s29 }
 0x21e   :  { %vm484_vm2 = vcmp.gt.f32.partialorder %v478_v11, 0.0  ;;  %v486_v15 = vmul.f32 0.01, %v478_v11  ;;  %v482_v18 = vpop.f32.mrb[3].mxu1  ;;  %s1983_s30 = scalar_lea.vmem %s1443_s29, 448  ;;  %p1988_p5 = scmp.lt.s32.totalorder %s1443_s29, %s1443_s29 }
 0x21f   :  { %vm485_vm3 = vcmp.gt.f32.partialorder %v480_v13, 0.0  ;;  %v487_v20 = vmul.f32 0.01, %v480_v13  ;;  %p1984_p4 = scmp.ne.s32.totalorder %s1443_s29, %s1983_s30  ;;  %p1989_p6 = scmp.lt.s32.totalorder %s1983_s30, %s1983_s30 }
 0x220   :  { %v488_v21 = vsel %vm484_vm2, %v478_v11, %v486_v15  ;;  %v633_v11 = vrot.slane %v620_v8, %v632_v7 }
 0x221   :  { %v489_v22 = vsel %vm485_vm3, %v480_v13, %v487_v20  ;;  %v2135_v26 = vpack.c.bf16 %v488_v21, %v488_v21  ;;  %v637_v13 = vrot.slane %v620_v8, %v636_v9  ;;  %p1990_p7 = por %p1989_p6, %p1988_p5 }
 0x222   :  { %v491_v23 = vpack.c.bf16 %v489_v22, %v489_v22 }
 0x223   :  { %p1991_p8 = pnand %p1990_p7, %p1984_p4 }
 0x224   :  { %1265 = vmatprep.mubr.bf16.mxu0 %v491_v23  ;;  %1306 = vmatprep.mubr.bf16.mxu1 %v491_v23 }
 0x225   :  { %1266 = vmatmul.mubr.bf16.vlgmr.msra.gmra.mrb[4].mxu0 %v2135_v26  ;;  %1307 = vmatmul.mubr.bf16.vlgmr.msra.gmra.mrb[4].mxu1 %v2135_v26 }
 0x226   :  { %1316 = vmatpush1.bf16.msra.mxu0 %v1817_v24  ;;  %1618 = vmatpush3.bf16.msra.mxu1 %v1821_v25 }
 0x227   :  { %1347 = vmatprep.mubr.bf16.mxu0 %v491_v23  ;;  %1388 = vmatprep.mubr.bf16.mxu1 %v491_v23 }
 0x228   :  { %1317 = vmatprep.subr.bf16.mxu0 %v1824_v27  ;;  %1619 = vmatprep.subr.bf16.mxu1 %v1825_v28 }
 0x22a   :  { %1318 = vmatpush1.bf16.msra.mxu0 %v1822_v29  ;;  %1620 = vmatpush3.bf16.msra.mxu1 %v1826_v30 }
 0x22b   :  { %1319 = vmatprep.subr.bf16.mxu0 %v1829_v31  ;;  %1621 = vmatprep.subr.bf16.mxu1 %v1830_v32 }
 0x22e   :  { %1320 = vmatpush1.bf16.msra.mxu0 %v1827_v33  ;;  %1622 = vmatpush3.bf16.msra.mxu1 %v1831_v34 }
 0x22f   :  { %1321 = vmatprep.subr.bf16.mxu0 %v1834_v35  ;;  %1623 = vmatprep.subr.bf16.mxu1 %v1835_v36 }
 0x232   :  { %1322 = vmatpush1.bf16.msra.mxu0 %v1832_v37  ;;  %1624 = vmatpush3.bf16.msra.mxu1 %v1836_v38  ;;  %v648_v37 = vsub.s32 6, %v2117_v16 }
 0x233   :  { %1323 = vmatprep.subr.bf16.mxu0 %v1839_v39  ;;  %1625 = vmatprep.subr.bf16.mxu1 %v1840_v40 }
 0x234   :  { %v649_v39 = vrot.slane %v620_v8, %v648_v37 }
 0x236   :  { %1324 = vmatpush1.bf16.msra.mxu0 %v1837_v41  ;;  %1626 = vmatpush3.bf16.msra.mxu1 %v1841_v42 }
 0x237   :  { %1325 = vmatprep.subr.bf16.mxu0 %v1844_v43  ;;  %1627 = vmatprep.subr.bf16.mxu1 %v1845_v44 }
 0x23a   :  { %1326 = vmatpush1.bf16.msra.mxu0 %v1842_v45  ;;  %1628 = vmatpush3.bf16.msra.mxu1 %v1846_v46 }
 0x23b   :  { %1327 = vmatprep.subr.bf16.mxu0 %v1849_v47  ;;  %1629 = vmatprep.subr.bf16.mxu1 %v1850_v48  ;;  %v640_v48 = vsub.s32 4, %v2117_v16 }
 0x23e   :  { %1328 = vmatpush1.bf16.msra.mxu0 %v1847_v49  ;;  %1630 = vmatpush3.bf16.msra.mxu1 %v1851_v50  ;;  %v644_v49 = vsub.s32 5, %v2117_v16  ;;  %v641_v50 = vrot.slane %v620_v8, %v640_v48 }
 0x23f   :  { %1329 = vmatprep.subr.bf16.mxu0 %v1854_v51  ;;  %1631 = vmatprep.subr.bf16.mxu1 %v1855_v52 }
 0x240   :  { %v645_v51 = vrot.slane %v620_v8, %v644_v49 }
 0x242   :  { %1330 = vmatpush1.bf16.msra.mxu0 %v1852_v53  ;;  %1632 = vmatpush3.bf16.msra.mxu1 %v1856_v54 }
 0x243   :  { %1331 = vmatprep.subr.bf16.mxu0 %v1859_v55 }
 0x245   :  { %1389 = vmatmul.mubr.bf16.vlgmr.msra.gmra.mrb[8].mxu1 %v2135_v26 }
 0x246   :  { %1332 = vmatpush1.bf16.msra.mxu0 %v1857_v56 }
 0x247   :  { %1333 = vmatprep.subr.bf16.mxu0 %v1862_v57 }
 0x24a   :  { %1334 = vmatpush1.bf16.msra.mxu0 %v1860_v58 }
 0x24b   :  { %1335 = vmatprep.subr.bf16.mxu0 %v1865_v59 }
 0x24e   :  { %1336 = vmatpush1.bf16.msra.mxu0 %v1863_v60 }
 0x24f   :  { %1337 = vmatprep.subr.bf16.mxu0 %v1868_v61 }
 0x252   :  { %1338 = vmatpush1.bf16.msra.mxu0 %v1866_v62 }
 0x253   :  { %1339 = vmatprep.subr.bf16.mxu0 %v1871_v63 }
 0x256   :  { %1340 = vmatpush1.bf16.msra.mxu0 %v1869_v0 }
 0x257   :  { %1341 = vmatprep.subr.bf16.mxu0 %v1874_v1 }
 0x25a   :  { %1342 = vmatpush1.bf16.msra.mxu0 %v1872_v2 }
 0x25b   :  { %1343 = vmatprep.subr.bf16.mxu0 %v1877_v3 }
 0x25e   :  { %1344 = vmatpush1.bf16.msra.mxu0 %v1875_v4 }
 0x25f   :  { %1345 = vmatprep.subr.bf16.mxu0 %v1880_v5 }
 0x262   :  { %1346 = vmatpush1.bf16.msra.mxu0 %v1878_v6 }
 0x265   :  { %1348 = vmatmul.mubr.bf16.vlgmr.msra.gmra.mrb[8].mxu0 %v2135_v26 }
 0x2f8   :  { %v1267_v14 = vpop.f32.mrb[4].mxu0  ;;  %v1308_v15 = vpop.f32.mrb[4].mxu1 }
 0x2f9   :  { %v1268_v18 = vadd.f32 %v1267_v14, %v625_v10  ;;  %v1309_v20 = vadd.f32 %v1308_v15, %v633_v11  ;;  %v1269_v21 = vpop.f32.mrb[5].mxu0  ;;  %v1310_v22 = vpop.f32.mrb[5].mxu1 }
 0x2fa   :  { %v1270_v23 = vadd.f32 %v1269_v21, %v629_v12  ;;  %v1311_v24 = vadd.f32 %v1310_v22, %v637_v13  ;;  %v1271_v25 = vpop.f32.mrb[6].mxu0  ;;  %v1312_v26 = vpop.f32.mrb[6].mxu1 }
 0x2fb   :  { %v1396_v27 = vpack.c.bf16 %v1268_v18, %v1268_v18  ;;  %v1398_v28 = vpack.c.bf16 %v1309_v20, %v1309_v20  ;;  %v1272_v29 = vpop.f32.mrb[7].mxu0  ;;  %v1313_v30 = vpop.f32.mrb[7].mxu1 }
 0x2fc   :  { %v1397_v31 = vpack.c.bf16 %v1270_v23, %v1270_v23  ;;  %v1399_v17 = vpack.c.bf16 %v1311_v24, %v1311_v24 }
 0x2fd   :  { %1881 = vtanh.bf16 %v1396_v27 }
 0x2fe   :  { %1883 = vtanh.bf16 %v1398_v28 }
 0x2ff   :  { %1885 = vtanh.bf16 %v1397_v31 }
 0x300   :  { %1887 = vtanh.bf16 %v1399_v17 }
 0x308   :  { %v1882_v19 = vpop.eup %1881 }
 0x309   :  { %v1884_v32 = vpop.eup %1883 }
 0x30a   :  { %v1886_v33 = vpop.eup %1885 }
 0x30b   :  { %v1888_v34 = vpop.eup %1887  ;;  %v1613_v35 = vcombine.low %v1882_v19, %v1886_v33 }
 0x30c   :  { %v1614_v36 = vcombine.low %v1884_v32, %v1888_v34 }
 0x30d   :  { %1432 = vst [vmem:[#allocation10] sm:$0xff] %v1613_v35 }
 0x30e   :  { %1433 = vst [vmem:[#allocation10 + $0x8] sm:$0xff] %v1614_v36 }
 0x318   :  { %v1633_v38 = vpop.f32.mrb[8].mxu1 }
 0x319   :  { %v1634_v40 = vpop.f32.mrb[9].mxu1 }
 0x31a   :  { %v1635_v41 = vadd.f32 %v1634_v40, %v1633_v38  ;;  %v1636_v42 = vpop.f32.mrb[10].mxu1 }
 0x31b   :  { %v1637_v43 = vpop.f32.mrb[11].mxu1 }
 0x31c   :  { %v1391_v44 = vadd.f32 %v1635_v41, %v649_v39 }
 0x31e   :  { %v1402_v45 = vpack.c.bf16 %v1391_v44, %v1391_v44 }
 0x320   :  { %1889 = vtanh.bf16 %v1402_v45 }
 0x32b   :  { %v1890_v46 = vpop.eup %1889 }
 0x32c   :  { %v1616_v47 = vcombine.low %v1890_v46, %v1890_v46 }
 0x32e   :  { %1435 = vst [vmem:[#allocation10 + $0x18] sm:$0xf] %v1616_v47 }
 0x338   :  { %v1349_v52 = vpop.f32.mrb[8].mxu0 }
 0x339   :  { %v1350_v53 = vadd.f32 %v1349_v52, %v641_v50  ;;  %v1351_v54 = vpop.f32.mrb[9].mxu0 }
 0x33a   :  { %v1352_v55 = vadd.f32 %v1351_v54, %v645_v51  ;;  %v1353_v56 = vpop.f32.mrb[10].mxu0 }
 0x33b   :  { %v1400_v57 = vpack.c.bf16 %v1350_v53, %v1350_v53  ;;  %v1354_v58 = vpop.f32.mrb[11].mxu0 }
 0x33c   :  { %v1401_v59 = vpack.c.bf16 %v1352_v55, %v1352_v55 }
 0x33d   :  { %1891 = vtanh.bf16 %v1400_v57 }
 0x33e   :  { %1893 = vtanh.bf16 %v1401_v59 }
 0x348   :  { %v1892_v60 = vpop.eup %1891 }
 0x349   :  { %v1894_v61 = vpop.eup %1893 }
 0x34a   :  { %v1615_v62 = vcombine.low %v1892_v60, %v1894_v61 }
 0x34c   :  { %1434 = vst [vmem:[#allocation10 + $0x10] sm:$0xff] %v1615_v62 }
 0x34d   :  { %1994 = shalt.err (!%p1991_p8)
}
 0x34e   :  { %s1995_s10 = scalar_lea.hbm %s2170_s7, 448 }
 0x34f   :  { %p1996_p9 = scmp.ne.s32.totalorder %s2170_s7, %s1995_s10  ;;  %p1999_p10 = scmp.lt.u32.totalorder %s1995_s10, %s2170_s7 }
 0x351   :  { %p2001_p11 = pnand %p1999_p10, %p1996_p9 }
 0x353   :  { %2004 = shalt.err (!%p2001_p11)
}
 0x354   :  { %1445 = dma.vmem_to_hbm [thread:$0]  %s1443_s29, 448, %s2170_s7, [#allocation4]  }
 0x355   :  { %2011 = dma.done.wait [#allocation4], 448  }
 0x356   :  { %2012 = vsyncadd [#allocation4], 4294966848 }
 0x357   :  { %1449 = vsyncpa [#allocation3], 1 }
 0x358   :  { %1450 = vsyncpa [#allocation6], 1 }
 0x359   :  { %1451 = vsyncpa [#allocation9], 1 }
 0x35a   :  { %1452 = vsyncpa [#allocation4], 1 }

</bundles_post_ra>
